<compile_context>
chip_gen: v6e
topology: v6e:2x2x1
jax: 0.10.0
libtpu: 0.0.40
codegen_flags: <defaults>
</compile_context>

<pallas_src>
import math
from functools import lru_cache, partial

import numpy as np
import jax
import jax.numpy as jnp
from jax.experimental import pallas as pl
from jax.experimental.pallas import tpu as pltpu


def _round_up(a: int, m: int) -> int:
    return (a + m - 1) // m * m


def _gcc_kernel(xy_ref, fwd_ref, inv_ref, out_ref, lre_ref, lim_ref,
                *, epsilon, beta, fp):
    """Grid = (batch tiles i [parallel], output-time tiles j [arbitrary]).

    j == 0 : fused rfft([x;y]) as ONE MXU matmul, Gxy = X*conj(Y), PHAT
             weighting; weighted Re/Im spectra stored in VMEM scratch (bf16).
    every j: two accumulated MXU matmuls against the streamed inverse basis
             (irfft + fftshift + max_tau window baked into its columns).
    """
    tb = xy_ref.shape[0] // 2          # x rows [0:tb], y rows [tb:2tb]

    @pl.when(pl.program_id(1) == 0)
    def _spectrum_and_phat():
        # Forward real-DFT of both channels in one matmul (bf16 -> f32 acc).
        spec = jnp.dot(xy_ref[...], fwd_ref[...],
                       preferred_element_type=jnp.float32)       # [2TB, 2Fp]
        xr, xi = spec[:tb, :fp], spec[:tb, fp:]
        yr, yi = spec[tb:, :fp], spec[tb:, fp:]

        # Gxy = X * conj(Y), PHAT weighting (f32 VPU + EUP reciprocal).
        gr = xr * yr + xi * yi
        gi = xi * yr - xr * yi
        mag2 = gr * gr + gi * gi
        phi = pl.reciprocal(jnp.sqrt(mag2) + epsilon, approx=True)
        w = phi if beta == 1.0 else jnp.exp(beta * jnp.log(phi))   # phi > 0
        # Padded frequency bins / padded batch rows have gr = gi = 0 exactly;
        # zero their weight so (1/eps)**beta can never produce 0*inf -> NaN.
        w = jnp.where(mag2 > 0.0, w, 0.0)

        lre_ref[...] = (gr * w).astype(lre_ref.dtype)
        lim_ref[...] = (gi * w).astype(lim_ref.dtype)

    # irfft + fftshift (+ max_tau crop) as two accumulated MXU matmuls
    # against the Re/Im halves of the streamed inverse basis tile.
    out_ref[...] = (
        jnp.dot(lre_ref[...], inv_ref[0], preferred_element_type=jnp.float32)
        + jnp.dot(lim_ref[...], inv_ref[1], preferred_element_type=jnp.float32))


@lru_cache(maxsize=16)
def _gcc_bases(L: int, Lp: int, Fp: int, out_off: int, n_out: int, n_out_p: int):
    """bf16 forward [Lp, 2Fp] basis and inverse basis (2, Fp, n_out_p) with
    fftshift and the max_tau output window folded into the columns."""
    n = 2 * L
    F = n // 2 + 1

    # Forward rfft basis (zero-padding of x to n is implicit: rows t >= L
    # only ever multiply zero-padded input samples).
    t = np.arange(Lp, dtype=np.float64)[:, None]
    k = np.arange(F, dtype=np.float64)[None, :]
    ang = 2.0 * np.pi * t * k / n
    fwd = np.zeros((Lp, 2 * Fp), dtype=np.float64)
    fwd[:, :F] = np.cos(ang)                       # Re part
    fwd[:, Fp:Fp + F] = -np.sin(ang)               # Im part

    # Inverse real-DFT basis:   out[c] = irfft(G, n)[((out_off + c) + n//2) % n]
    cols = out_off + np.arange(n_out)
    tt = ((cols + n // 2) % n).astype(np.float64)
    kk = np.arange(F, dtype=np.float64)[:, None]
    ang2 = 2.0 * np.pi * kk * tt[None, :] / n
    wk = np.where((np.arange(F) == 0) | (np.arange(F) == n // 2), 1.0, 2.0)[:, None]
    inv = np.zeros((2, Fp, n_out_p), dtype=np.float64)
    inv[0, :F, :n_out] = wk * np.cos(ang2) / n     # multiplies Re(G)*w
    inv[1, :F, :n_out] = -wk * np.sin(ang2) / n    # multiplies Im(G)*w

    return (jnp.asarray(fwd, dtype=jnp.bfloat16),
            jnp.asarray(inv, dtype=jnp.bfloat16))


def _vmem_limit_bytes() -> int:
    try:
        cap = int(pltpu.get_tpu_info().vmem_capacity_bytes)
    except Exception:
        cap = 64 * 1024 * 1024
    # Leave ~1/8 headroom below per-core capacity; cap below v5e/v6e physical.
    return min(max(cap - cap // 8, 32 * 1024 * 1024), 112 * 1024 * 1024)


def gcc_phat_pair(x, y, *, epsilon=1e-3, beta=1.0, max_tau=None,
                  tdoa_estimate=False):
    """Equivalent of GCC.forward(x, y) for equal-length real signals [..., L].

    Note: bf16 MXU path with f32 accumulation; the PHAT reciprocal uses the
    EUP approximate reciprocal (~1e-3 rel error) — fine for peak/TDOA use.
    """
    assert x.shape == y.shape, "this implementation assumes equal-length inputs"
    lead = x.shape[:-1]
    L = x.shape[-1]
    n = 2 * L                     # n = x.shape[-1] + y.shape[-1]
    F = n // 2 + 1                # rfft bins
    B = int(np.prod(lead)) if lead else 1

    Lp = _round_up(L, 128)        # lane-dense / aligned contraction dim
    Fp = _round_up(F, 128)        # lane-dense spectrum (padded bins are zero)

    # Output window: fftshift + max_tau crop baked into the inverse basis,
    # padded up to a lane-dense multiple of 128 (sliced away in the wrapper).
    if max_tau and max_tau < n / 2:
        out_off = n // 2 - int(max_tau)
        n_out = 2 * int(max_tau) + 1
    else:
        out_off, n_out = 0, n
    n_out_p = _round_up(n_out, 128)

    # Batch tile: multiples of 16 rows (bf16 sublane packing); 256 rows for
    # large batches fills the 256-wide MXU on v6e/v7x.
    if B <= 128:
        TB = _round_up(B, 16)
    elif B >= 256:
        TB = 256
    else:
        TB = 128
    Bp = _round_up(B, TB)

    # Output-time tile: stream the inverse basis when the window is large.
    if n_out_p <= 1024:
        TN = n_out_p
    elif n_out_p % 512 == 0:
        TN = 512
    elif n_out_p % 256 == 0:
        TN = 256
    else:
        TN = 128

    grid = (Bp // TB, n_out_p // TN)

    # Pre-interleave x/y per batch tile: rows [x tile_i ; y tile_i] so the
    # kernel needs NO in-kernel concatenate/reshape — one DMA stream, and the
    # forward matmul runs with M = 2*TB rows per weight push.
    xb = jnp.pad(jnp.reshape(x, (B, L)).astype(jnp.bfloat16),
                 ((0, Bp - B), (0, Lp - L)))
    yb = jnp.pad(jnp.reshape(y, (B, L)).astype(jnp.bfloat16),
                 ((0, Bp - B), (0, Lp - L)))
    nt = Bp // TB
    xy = jnp.stack([xb.reshape(nt, TB, Lp), yb.reshape(nt, TB, Lp)],
                   axis=1).reshape(2 * Bp, Lp)

    fwd, inv = _gcc_bases(L, Lp, Fp, out_off, n_out, n_out_p)

    kernel = partial(_gcc_kernel, epsilon=float(epsilon), beta=float(beta), fp=Fp)
    vmem_limit = _vmem_limit_bytes()

    def _call(single_buffer_fwd: bool):
        # Grid-constant forward basis: single-buffer it to halve its VMEM cost.
        fwd_kw = {"pipeline_mode": pl.Buffered(1)} if single_buffer_fwd else {}
        return pl.pallas_call(
            kernel,
            out_shape=jax.ShapeDtypeStruct((Bp, n_out_p), jnp.float32),
            grid=grid,
            in_specs=[
                pl.BlockSpec((2 * TB, Lp), lambda i, j: (i, 0)),
                pl.BlockSpec((Lp, 2 * Fp), lambda i, j: (0, 0), **fwd_kw),
                pl.BlockSpec((2, Fp, TN), lambda i, j: (0, 0, j)),
            ],
            out_specs=pl.BlockSpec((TB, TN), lambda i, j: (i, j)),
            scratch_shapes=[
                pltpu.VMEM((TB, Fp), jnp.bfloat16),   # Re(Gxy) * w
                pltpu.VMEM((TB, Fp), jnp.bfloat16),   # Im(Gxy) * w
            ],
            compiler_params=pltpu.CompilerParams(
                dimension_semantics=("parallel", "arbitrary"),
                vmem_limit_bytes=vmem_limit,
            ),
        )(xy, fwd, inv)

    try:
        gcc = _call(True)
    except Exception:
        # pipeline_mode=pl.Buffered(1) unavailable on this jax build — fall
        # back to default double-buffering (correct, slightly more VMEM).
        gcc = _call(False)

    gcc = jnp.reshape(gcc[:B, :n_out], lead + (n_out,))

    if tdoa_estimate:
        return jnp.argmax(gcc, axis=-1) - math.floor(gcc.shape[-1] / 2)
    return gcc


def gcc_forward(x, **kw):
    """Equivalent of GCC.forward(x): split along dim=-2 into the two channels."""
    x1 = x[..., 0:1, :]
    y1 = x[..., 1:2, :]
    return gcc_phat_pair(x1, y1, **kw)


if __name__ == "__main__":
    key = jax.random.PRNGKey(0)
    batch, L = 2, 64
    # deterministic module "parameters": epsilon=1e-3, beta=1.0 (torch.tensor([1]))
    x = jax.random.normal(key, (batch, 2, L), dtype=jnp.float32)

    out = gcc_forward(x)                      # shape [batch, 1, 2*L]
    out = jax.block_until_ready(out)

    # Pure-JAX FFT reference (same math, f32) for a sanity check.
    xa = x[..., 0:1, :]
    ya = x[..., 1:2, :]
    n = 2 * L
    X = jnp.fft.rfft(xa, n=n)
    Y = jnp.fft.rfft(ya, n=n)
    Gxy = X * jnp.conj(Y)
    phi = 1.0 / (jnp.abs(Gxy) + 1e-3)
    ref = jnp.fft.fftshift(jnp.fft.irfft(Gxy * phi, n=n), axes=-1)

    assert out.shape == ref.shape == (batch, 1, n)
    max_err = float(jnp.max(jnp.abs(out - ref)))
    # bf16 MXU path: tolerance loosened slightly vs the f32 reference.
    assert max_err < 3e-2, f"mismatch vs FFT reference: {max_err}"

    # max_tau window (baked into the inverse basis) vs sliced reference.
    max_tau = 10
    out_tau = jax.block_until_ready(gcc_forward(x, max_tau=max_tau))
    ref_tau = ref[..., n // 2 - max_tau: n // 2 + max_tau + 1]
    assert out_tau.shape == ref_tau.shape == (batch, 1, 2 * max_tau + 1)
    err_tau = float(jnp.max(jnp.abs(out_tau - ref_tau)))
    assert err_tau < 3e-2, f"max_tau window mismatch: {err_tau}"

    # tdoa_estimate glue path (argmax on noise-like data is not a stable
    # equality target across float paths, so only the shape is checked).
    tdoa = jax.block_until_ready(gcc_forward(x, max_tau=max_tau, tdoa_estimate=True))
    assert tdoa.shape == (batch, 1)

    print("KERNEL_OK")
</pallas_src>

<mosaic_0001>
module attributes {stable_mosaic.version = 11 : i64} {
  func.func @_gcc_kernel(%arg0: i32, %arg1: i32, %arg2: memref<32x128xbf16, #tpu.memory_space<vmem>>, %arg3: memref<128x256xbf16, #tpu.memory_space<vmem>>, %arg4: memref<2x128x128xbf16, #tpu.memory_space<vmem>>, %arg5: memref<16x128xf32, #tpu.memory_space<vmem>>, %arg6: memref<16x128xbf16, #tpu.memory_space<vmem>>, %arg7: memref<16x128xbf16, #tpu.memory_space<vmem>>) attributes {dimension_semantics = [#tpu.dimension_semantics<parallel>, #tpu.dimension_semantics<arbitrary>], iteration_bounds = array<i64: 1, 1>, scalar_prefetch = 0 : i64, scratch_operands = 2 : i64, tpu.core_type = #tpu.core_type<tc>, window_params = [{transform_indices = @transform_0, window_bounds = array<i64: 32, 128>}, {pipeline_mode = #tpu.pipeline_mode<synchronous>, transform_indices = @transform_1, window_bounds = array<i64: 128, 256>}, {transform_indices = @transform_2, window_bounds = array<i64: 2, 128, 128>}, {transform_indices = @transform_3, window_bounds = array<i64: 16, 128>}]} {
    %c0_i32 = arith.constant 0 : i32
    %0 = arith.cmpi eq, %arg1, %c0_i32 : i32
    %1 = arith.extui %0 : i1 to i32
    %c0_i32_0 = arith.constant 0 : i32
    %2 = arith.cmpi ne, %1, %c0_i32_0 : i32
    scf.if %2 {
      %c0_12 = arith.constant 0 : index
      %c0_13 = arith.constant 0 : index
      %13 = vector.load %arg2[%c0_12, %c0_13] : memref<32x128xbf16, #tpu.memory_space<vmem>>, vector<32x128xbf16>
      %c0_14 = arith.constant 0 : index
      %c0_15 = arith.constant 0 : index
      %14 = vector.load %arg3[%c0_14, %c0_15] : memref<128x256xbf16, #tpu.memory_space<vmem>>, vector<128x256xbf16>
      %cst_16 = arith.constant dense<0.000000e+00> : vector<32x256xf32>
      %15 = tpu.matmul %13, %14, %cst_16 {dimension_numbers = #tpu.dot_dimension_numbers<[1], [0], [0], [1], [0, 0, 1, 1], [], []>} : vector<32x128xbf16>, vector<128x256xbf16>, vector<32x256xf32> -> vector<32x256xf32>
      %16 = vector.extract_strided_slice %15 {offsets = [0, 0], sizes = [16, 128], strides = [1, 1]} : vector<32x256xf32> to vector<16x128xf32>
      %17 = vector.extract_strided_slice %15 {offsets = [0, 128], sizes = [16, 128], strides = [1, 1]} : vector<32x256xf32> to vector<16x128xf32>
      %18 = vector.extract_strided_slice %15 {offsets = [16, 0], sizes = [16, 128], strides = [1, 1]} : vector<32x256xf32> to vector<16x128xf32>
      %19 = vector.extract_strided_slice %15 {offsets = [16, 128], sizes = [16, 128], strides = [1, 1]} : vector<32x256xf32> to vector<16x128xf32>
      %20 = arith.mulf %16, %18 : vector<16x128xf32>
      %21 = arith.mulf %17, %19 : vector<16x128xf32>
      %22 = arith.addf %20, %21 : vector<16x128xf32>
      %23 = arith.mulf %17, %18 : vector<16x128xf32>
      %24 = arith.mulf %16, %19 : vector<16x128xf32>
      %25 = arith.subf %23, %24 : vector<16x128xf32>
      %26 = arith.mulf %22, %22 : vector<16x128xf32>
      %27 = arith.mulf %25, %25 : vector<16x128xf32>
      %28 = arith.addf %26, %27 : vector<16x128xf32>
      %29 = math.sqrt %28 : vector<16x128xf32>
      %cst_17 = arith.constant 1.000000e-03 : f32
      %30 = vector.broadcast %cst_17 : f32 to vector<16x128xf32>
      %31 = arith.addf %29, %30 : vector<16x128xf32>
      %32 = tpu.reciprocal %31 {approx = true} : vector<16x128xf32> -> vector<16x128xf32>
      %cst_18 = arith.constant 0.000000e+00 : f32
      %33 = vector.broadcast %cst_18 : f32 to vector<16x128xf32>
      %34 = arith.cmpf ogt, %28, %33 : vector<16x128xf32>
      %cst_19 = arith.constant 0.000000e+00 : f32
      %35 = vector.broadcast %cst_19 : f32 to vector<16x128xf32>
      %36 = arith.select %34, %32, %35 : vector<16x128xi1>, vector<16x128xf32>
      %37 = arith.mulf %22, %36 : vector<16x128xf32>
      %38 = arith.truncf %37 : vector<16x128xf32> to vector<16x128xbf16>
      %c0_20 = arith.constant 0 : index
      %c0_21 = arith.constant 0 : index
      %39 = vector.load %arg6[%c0_20, %c0_21] : memref<16x128xbf16, #tpu.memory_space<vmem>>, vector<16x128xbf16>
      tpu.vector_store %arg6[%c0_20, %c0_21], %38 {strides = array<i32>} : memref<16x128xbf16, #tpu.memory_space<vmem>>, vector<16x128xbf16>,
      %40 = arith.mulf %25, %36 : vector<16x128xf32>
      %41 = arith.truncf %40 : vector<16x128xf32> to vector<16x128xbf16>
      %c0_22 = arith.constant 0 : index
      %c0_23 = arith.constant 0 : index
      %42 = vector.load %arg7[%c0_22, %c0_23] : memref<16x128xbf16, #tpu.memory_space<vmem>>, vector<16x128xbf16>
      tpu.vector_store %arg7[%c0_22, %c0_23], %41 {strides = array<i32>} : memref<16x128xbf16, #tpu.memory_space<vmem>>, vector<16x128xbf16>,
    } else {
    }
    %c0 = arith.constant 0 : index
    %c0_1 = arith.constant 0 : index
    %3 = vector.load %arg6[%c0, %c0_1] : memref<16x128xbf16, #tpu.memory_space<vmem>>, vector<16x128xbf16>
    %c0_2 = arith.constant 0 : index
    %c0_3 = arith.constant 0 : index
    %c0_4 = arith.constant 0 : index
    %4 = vector.load %arg4[%c0_2, %c0_3, %c0_4] : memref<2x128x128xbf16, #tpu.memory_space<vmem>>, vector<1x128x128xbf16>
    %5 = vector.shape_cast %4 : vector<1x128x128xbf16> to vector<128x128xbf16>
    %cst = arith.constant dense<0.000000e+00> : vector<16x128xf32>
    %6 = tpu.matmul %3, %5, %cst {dimension_numbers = #tpu.dot_dimension_numbers<[1], [0], [0], [1], [0, 0, 1, 1], [], []>} : vector<16x128xbf16>, vector<128x128xbf16>, vector<16x128xf32> -> vector<16x128xf32>
    %c0_5 = arith.constant 0 : index
    %c0_6 = arith.constant 0 : index
    %7 = vector.load %arg7[%c0_5, %c0_6] : memref<16x128xbf16, #tpu.memory_space<vmem>>, vector<16x128xbf16>
    %c1 = arith.constant 1 : index
    %c0_7 = arith.constant 0 : index
    %c0_8 = arith.constant 0 : index
    %8 = vector.load %arg4[%c1, %c0_7, %c0_8] : memref<2x128x128xbf16, #tpu.memory_space<vmem>>, vector<1x128x128xbf16>
    %9 = vector.shape_cast %8 : vector<1x128x128xbf16> to vector<128x128xbf16>
    %cst_9 = arith.constant dense<0.000000e+00> : vector<16x128xf32>
    %10 = tpu.matmul %7, %9, %cst_9 {dimension_numbers = #tpu.dot_dimension_numbers<[1], [0], [0], [1], [0, 0, 1, 1], [], []>} : vector<16x128xbf16>, vector<128x128xbf16>, vector<16x128xf32> -> vector<16x128xf32>
    %11 = arith.addf %6, %10 : vector<16x128xf32>
    %c0_10 = arith.constant 0 : index
    %c0_11 = arith.constant 0 : index
    %12 = vector.load %arg5[%c0_10, %c0_11] : memref<16x128xf32, #tpu.memory_space<vmem>>, vector<16x128xf32>
    tpu.vector_store %arg5[%c0_10, %c0_11], %11 {strides = array<i32>} : memref<16x128xf32, #tpu.memory_space<vmem>>, vector<16x128xf32>,
    return
  }
  func.func @transform_0(%arg0: i32, %arg1: i32) -> (i32, i32) {
    %c0_i32 = arith.constant 0 : i32
    %c0_i32_0 = arith.constant 0 : i32
    return %arg0, %c0_i32 : i32, i32
  }
  func.func @transform_1(%arg0: i32, %arg1: i32) -> (i32, i32) {
    %c0_i32 = arith.constant 0 : i32
    %c0_i32_0 = arith.constant 0 : i32
    %c0_i32_1 = arith.constant 0 : i32
    return %c0_i32, %c0_i32_0 : i32, i32
  }
  func.func @transform_2(%arg0: i32, %arg1: i32) -> (i32, i32, i32) {
    %c0_i32 = arith.constant 0 : i32
    %c0_i32_0 = arith.constant 0 : i32
    %c0_i32_1 = arith.constant 0 : i32
    return %c0_i32, %c0_i32_0, %arg1 : i32, i32, i32
  }
  func.func @transform_3(%arg0: i32, %arg1: i32) -> (i32, i32) {
    %c0_i32 = arith.constant 0 : i32
    return %arg0, %arg1 : i32, i32
  }
}

module attributes {stable_mosaic.version = 11 : i64} {
  func.func @_gcc_kernel(%arg0: i32, %arg1: i32, %arg2: memref<32x128xbf16, #tpu.memory_space<vmem>>, %arg3: memref<128x256xbf16, #tpu.memory_space<vmem>>, %arg4: memref<2x128x128xbf16, #tpu.memory_space<vmem>>, %arg5: memref<16x128xf32, #tpu.memory_space<vmem>>, %arg6: memref<16x128xbf16, #tpu.memory_space<vmem>>, %arg7: memref<16x128xbf16, #tpu.memory_space<vmem>>) attributes {dimension_semantics = [#tpu.dimension_semantics<parallel>, #tpu.dimension_semantics<arbitrary>], iteration_bounds = array<i64: 1, 1>, scalar_prefetch = 0 : i64, scratch_operands = 2 : i64, tpu.core_type = #tpu.core_type<tc>, window_params = [{transform_indices = @transform_0, window_bounds = array<i64: 32, 128>}, {pipeline_mode = #tpu.pipeline_mode<synchronous>, transform_indices = @transform_1, window_bounds = array<i64: 128, 256>}, {transform_indices = @transform_2, window_bounds = array<i64: 2, 128, 128>}, {transform_indices = @transform_3, window_bounds = array<i64: 16, 128>}]} {
    %c0_i32 = arith.constant 0 : i32
    %0 = arith.cmpi eq, %arg1, %c0_i32 : i32
    %1 = arith.extui %0 : i1 to i32
    %c0_i32_0 = arith.constant 0 : i32
    %2 = arith.cmpi ne, %1, %c0_i32_0 : i32
    scf.if %2 {
      %c0_12 = arith.constant 0 : index
      %c0_13 = arith.constant 0 : index
      %13 = vector.load %arg2[%c0_12, %c0_13] : memref<32x128xbf16, #tpu.memory_space<vmem>>, vector<32x128xbf16>
      %c0_14 = arith.constant 0 : index
      %c0_15 = arith.constant 0 : index
      %14 = vector.load %arg3[%c0_14, %c0_15] : memref<128x256xbf16, #tpu.memory_space<vmem>>, vector<128x256xbf16>
      %cst_16 = arith.constant dense<0.000000e+00> : vector<32x256xf32>
      %15 = tpu.matmul %13, %14, %cst_16 {dimension_numbers = #tpu.dot_dimension_numbers<[1], [0], [0], [1], [0, 0, 1, 1], [], []>} : vector<32x128xbf16>, vector<128x256xbf16>, vector<32x256xf32> -> vector<32x256xf32>
      %16 = vector.extract_strided_slice %15 {offsets = [0, 0], sizes = [16, 128], strides = [1, 1]} : vector<32x256xf32> to vector<16x128xf32>
      %17 = vector.extract_strided_slice %15 {offsets = [0, 128], sizes = [16, 128], strides = [1, 1]} : vector<32x256xf32> to vector<16x128xf32>
      %18 = vector.extract_strided_slice %15 {offsets = [16, 0], sizes = [16, 128], strides = [1, 1]} : vector<32x256xf32> to vector<16x128xf32>
      %19 = vector.extract_strided_slice %15 {offsets = [16, 128], sizes = [16, 128], strides = [1, 1]} : vector<32x256xf32> to vector<16x128xf32>
      %20 = arith.mulf %16, %18 : vector<16x128xf32>
      %21 = arith.mulf %17, %19 : vector<16x128xf32>
      %22 = arith.addf %20, %21 : vector<16x128xf32>
      %23 = arith.mulf %17, %18 : vector<16x128xf32>
      %24 = arith.mulf %16, %19 : vector<16x128xf32>
      %25 = arith.subf %23, %24 : vector<16x128xf32>
      %26 = arith.mulf %22, %22 : vector<16x128xf32>
      %27 = arith.mulf %25, %25 : vector<16x128xf32>
      %28 = arith.addf %26, %27 : vector<16x128xf32>
      %29 = math.sqrt %28 : vector<16x128xf32>
      %cst_17 = arith.constant 1.000000e-03 : f32
      %30 = vector.broadcast %cst_17 : f32 to vector<16x128xf32>
      %31 = arith.addf %29, %30 : vector<16x128xf32>
      %32 = tpu.reciprocal %31 {approx = true} : vector<16x128xf32> -> vector<16x128xf32>
      %cst_18 = arith.constant 0.000000e+00 : f32
      %33 = vector.broadcast %cst_18 : f32 to vector<16x128xf32>
      %34 = arith.cmpf ogt, %28, %33 : vector<16x128xf32>
      %cst_19 = arith.constant 0.000000e+00 : f32
      %35 = vector.broadcast %cst_19 : f32 to vector<16x128xf32>
      %36 = arith.select %34, %32, %35 : vector<16x128xi1>, vector<16x128xf32>
      %37 = arith.mulf %22, %36 : vector<16x128xf32>
      %38 = arith.truncf %37 : vector<16x128xf32> to vector<16x128xbf16>
      %c0_20 = arith.constant 0 : index
      %c0_21 = arith.constant 0 : index
      %39 = vector.load %arg6[%c0_20, %c0_21] : memref<16x128xbf16, #tpu.memory_space<vmem>>, vector<16x128xbf16>
      tpu.vector_store %arg6[%c0_20, %c0_21], %38 {strides = array<i32>} : memref<16x128xbf16, #tpu.memory_space<vmem>>, vector<16x128xbf16>,
      %40 = arith.mulf %25, %36 : vector<16x128xf32>
      %41 = arith.truncf %40 : vector<16x128xf32> to vector<16x128xbf16>
      %c0_22 = arith.constant 0 : index
      %c0_23 = arith.constant 0 : index
      %42 = vector.load %arg7[%c0_22, %c0_23] : memref<16x128xbf16, #tpu.memory_space<vmem>>, vector<16x128xbf16>
      tpu.vector_store %arg7[%c0_22, %c0_23], %41 {strides = array<i32>} : memref<16x128xbf16, #tpu.memory_space<vmem>>, vector<16x128xbf16>,
    } else {
    }
    %c0 = arith.constant 0 : index
    %c0_1 = arith.constant 0 : index
    %3 = vector.load %arg6[%c0, %c0_1] : memref<16x128xbf16, #tpu.memory_space<vmem>>, vector<16x128xbf16>
    %c0_2 = arith.constant 0 : index
    %c0_3 = arith.constant 0 : index
    %c0_4 = arith.constant 0 : index
    %4 = vector.load %arg4[%c0_2, %c0_3, %c0_4] : memref<2x128x128xbf16, #tpu.memory_space<vmem>>, vector<1x128x128xbf16>
    %5 = vector.shape_cast %4 : vector<1x128x128xbf16> to vector<128x128xbf16>
    %cst = arith.constant dense<0.000000e+00> : vector<16x128xf32>
    %6 = tpu.matmul %3, %5, %cst {dimension_numbers = #tpu.dot_dimension_numbers<[1], [0], [0], [1], [0, 0, 1, 1], [], []>} : vector<16x128xbf16>, vector<128x128xbf16>, vector<16x128xf32> -> vector<16x128xf32>
    %c0_5 = arith.constant 0 : index
    %c0_6 = arith.constant 0 : index
    %7 = vector.load %arg7[%c0_5, %c0_6] : memref<16x128xbf16, #tpu.memory_space<vmem>>, vector<16x128xbf16>
    %c1 = arith.constant 1 : index
    %c0_7 = arith.constant 0 : index
    %c0_8 = arith.constant 0 : index
    %8 = vector.load %arg4[%c1, %c0_7, %c0_8] : memref<2x128x128xbf16, #tpu.memory_space<vmem>>, vector<1x128x128xbf16>
    %9 = vector.shape_cast %8 : vector<1x128x128xbf16> to vector<128x128xbf16>
    %cst_9 = arith.constant dense<0.000000e+00> : vector<16x128xf32>
    %10 = tpu.matmul %7, %9, %cst_9 {dimension_numbers = #tpu.dot_dimension_numbers<[1], [0], [0], [1], [0, 0, 1, 1], [], []>} : vector<16x128xbf16>, vector<128x128xbf16>, vector<16x128xf32> -> vector<16x128xf32>
    %11 = arith.addf %6, %10 : vector<16x128xf32>
    %c0_10 = arith.constant 0 : index
    %c0_11 = arith.constant 0 : index
    %12 = vector.load %arg5[%c0_10, %c0_11] : memref<16x128xf32, #tpu.memory_space<vmem>>, vector<16x128xf32>
    tpu.vector_store %arg5[%c0_10, %c0_11], %11 {strides = array<i32>} : memref<16x128xf32, #tpu.memory_space<vmem>>, vector<16x128xf32>,
    return
  }
  func.func @transform_0(%arg0: i32, %arg1: i32) -> (i32, i32) {
    %c0_i32 = arith.constant 0 : i32
    %c0_i32_0 = arith.constant 0 : i32
    return %arg0, %c0_i32 : i32, i32
  }
  func.func @transform_1(%arg0: i32, %arg1: i32) -> (i32, i32) {
    %c0_i32 = arith.constant 0 : i32
    %c0_i32_0 = arith.constant 0 : i32
    %c0_i32_1 = arith.constant 0 : i32
    return %c0_i32, %c0_i32_0 : i32, i32
  }
  func.func @transform_2(%arg0: i32, %arg1: i32) -> (i32, i32, i32) {
    %c0_i32 = arith.constant 0 : i32
    %c0_i32_0 = arith.constant 0 : i32
    %c0_i32_1 = arith.constant 0 : i32
    return %c0_i32, %c0_i32_0, %arg1 : i32, i32, i32
  }
  func.func @transform_3(%arg0: i32, %arg1: i32) -> (i32, i32) {
    %c0_i32 = arith.constant 0 : i32
    return %arg0, %arg1 : i32, i32
  }
}

</mosaic_0001>

<bundles_post_ra>
// kernel: tpu_custom_call.1
= control target key start
LH: loop header
LB: loop body
LE: loop exit
PB: predicated region body
PF: predicated region fallthrough
CT: control target
= control target key end

     0   :  { %8 = vsyncpa [#allocation5], 0  ;;  %s847_s0 = inlined_call_operand.hbm [shape: bf16[32,128], index: 0, kind: input, shape index: {}]   ;;  %s848_s1 = inlined_call_operand.hbm [shape: bf16[128,256], index: 1, kind: input, shape index: {}]   ;;  %s849_s2 = inlined_call_operand.hbm [shape: bf16[2,128,128], index: 2, kind: input, shape index: {}]   ;;  %s850_s3 = inlined_call_operand.hbm [shape: f32[16,128], index: 3, kind: output, shape index: {}]  }
   0x1   :  { %9 = vsyncpa [#allocation8], 0 }
   0x2   :  { %10 = vsyncpa [#allocation6], 0  ;;  %s798_s12 = smov [#allocation7]  }
   0x3   :  { %s28_s13 = sshll.u32 %s798_s12, 4  ;;  %s29_s13 = int_to_ptr.vmem [resolvable:$true] %s28_s13 }
   0x4   :  { %s720_s14 = scalar_lea.vmem %s29_s13, 2048  ;;  %p725_p1 = scmp.lt.s32.totalorder %s29_s13, %s29_s13 }
   0x5   :  { %p721_p0 = scmp.ne.s32.totalorder %s29_s13, %s720_s14  ;;  %p726_p2 = scmp.lt.s32.totalorder %s720_s14, %s720_s14 }
   0x7   :  { %p727_p3 = por %p726_p2, %p725_p1 }
   0x9   :  { %p728_p4 = pnand %p727_p3, %p721_p0 }
   0xb   :  { %731 = shalt.err (!%p728_p4)
}
   0xc   :  { %s799_s15 = smov 128   ;;  %s800_s16 = smov 8  }
   0xd   :  { %34 = dma.hbm_to_vmem [thread:$0]  %s848_s1, 2048, %s29_s13, [#allocation8], %s799_s15, %s799_s15, %s800_s16  }
   0xe   :  { %s801_s19 = smov [#allocation4]  }
   0xf   :  { %s16_s20 = sshll.u32 %s801_s19, 4  ;;  %s17_s20 = int_to_ptr.vmem [resolvable:$true] %s16_s20 }
  0x10   :  { %s740_s21 = scalar_lea.vmem %s17_s20, 256  ;;  %p745_p6 = scmp.lt.s32.totalorder %s17_s20, %s17_s20 }
  0x11   :  { %p741_p5 = scmp.ne.s32.totalorder %s17_s20, %s740_s21  ;;  %p746_p7 = scmp.lt.s32.totalorder %s740_s21, %s740_s21 }
  0x13   :  { %p747_p8 = por %p746_p7, %p745_p6 }
  0x15   :  { %p748_p9 = pnand %p747_p8, %p741_p5 }
  0x17   :  { %751 = shalt.err (!%p748_p9)
}
  0x18   :  { %s802_s22 = smov 64   ;;  %s803_s23 = smov 4  }
  0x19   :  { %22 = dma.hbm_to_vmem [thread:$0]  %s847_s0, 256, %s17_s20, [#allocation5], %s802_s22, %s802_s22, %s803_s23  }
  0x1a   :  { %s804_s26 = smov [#allocation9]  }
  0x1b   :  { %s40_s27 = sshll.u32 %s804_s26, 4  ;;  %s41_s27 = int_to_ptr.vmem [resolvable:$true] %s40_s27 }
  0x1c   :  { %s760_s1 = scalar_lea.vmem %s41_s27, 2048  ;;  %p765_p11 = scmp.lt.s32.totalorder %s41_s27, %s41_s27 }
  0x1d   :  { %p761_p10 = scmp.ne.s32.totalorder %s41_s27, %s760_s1  ;;  %p766_p12 = scmp.lt.s32.totalorder %s760_s1, %s760_s1 }
  0x1f   :  { %p767_p13 = por %p766_p12, %p765_p11 }
  0x21   :  { %p768_p0 = pnand %p767_p13, %p761_p10 }
  0x23   :  { %771 = shalt.err (!%p768_p0)
}
  0x24   :  { %46 = dma.hbm_to_vmem [thread:$0]  %s849_s2, 2048, %s41_s27, [#allocation8], %s802_s22, %s802_s22, %s803_s23  }
  0x25   :  { %792 = dma.done.wait [#allocation5], 256  }
  0x26   :  { %793 = vsyncadd [#allocation5], 4294967040 }
  0x27   :  { %794 = dma.done.wait [#allocation8], 4096  }
  0x28   :  { %795 = vsyncadd [#allocation8], 4294963200  ;;  %v805_v0 = vmov 0   ;;  %v660_v1 = vld [vmem:[#allocation7 + $0x74] ss:$8 sps:$4 sm:$0xff]   ;;  %v806_v21 = vmov 0.0  }
  0x29   :  { %205 = vmatprep.mubr.bf16.mxu0 %v805_v0  ;;  %v662_v2 = vld [vmem:[#allocation7 + $0x70] ss:$8 sps:$4 sm:$0xff]   ;;  %173 = vmatprep.subr.bf16.mxu0 %v660_v1  ;;  %v663_v3 = vld [vmem:[#allocation7 + $0x64] ss:$8 sps:$4 sm:$0xff]   ;;  %v665_v4 = vld [vmem:[#allocation7 + $0x60] ss:$8 sps:$4 sm:$0xff]  }
  0x2a   :  { %174 = vmatpush1.bf16.msra.mxu0 %v662_v2  ;;  %v666_v5 = vld [vmem:[#allocation7 + $0x54] ss:$8 sps:$4 sm:$0xff]   ;;  %v668_v6 = vld [vmem:[#allocation7 + $0x50] ss:$8 sps:$4 sm:$0xff]   ;;  %v669_v7 = vld [vmem:[#allocation7 + $0x44] ss:$8 sps:$4 sm:$0xff]   ;;  %609 = vmatprep.subr.bf16.mxu1 %v806_v21 }
  0x2b   :  { %175 = vmatprep.subr.bf16.mxu0 %v663_v3  ;;  %v671_v8 = vld [vmem:[#allocation7 + $0x40] ss:$8 sps:$4 sm:$0xff]   ;;  %v672_v9 = vld [vmem:[#allocation7 + $0x34] ss:$8 sps:$4 sm:$0xff]   ;;  %v674_v10 = vld [vmem:[#allocation7 + $0x30] ss:$8 sps:$4 sm:$0xff]  }
  0x2c   :  { %v675_v11 = vld [vmem:[#allocation7 + $0x24] ss:$8 sps:$4 sm:$0xff]   ;;  %v677_v12 = vld [vmem:[#allocation7 + $0x20] ss:$8 sps:$4 sm:$0xff]   ;;  %v678_v13 = vld [vmem:[#allocation7 + $0x14] ss:$8 sps:$4 sm:$0xff]  }
  0x2d   :  { %v680_v14 = vld [vmem:[#allocation7 + $0x10] ss:$8 sps:$4 sm:$0xff]   ;;  %v681_v15 = vld [vmem:[#allocation7 + $0x4] ss:$8 sps:$4 sm:$0xff]   ;;  %v683_v16 = vld [vmem:[#allocation7] ss:$8 sps:$4 sm:$0xff]  }
  0x2e   :  { %176 = vmatpush1.bf16.msra.mxu0 %v665_v4  ;;  %v684_v17 = vld [vmem:[#allocation4] sm:$0xff]   ;;  %v685_v18 = vld [vmem:[#allocation4 + $0x8] sm:$0xff]   ;;  %v690_v24 = vld [vmem:[#allocation9 + $0x68] sm:$0xff]   ;;  %vm807_vm0 = vmmov 0   ;;  %s808_s0 = smov [#allocation10]  }
  0x2f   :  { %177 = vmatprep.subr.bf16.mxu0 %v666_v5  ;;  %v686_v19 = vld [vmem:[#allocation9 + $0x78] sm:$0xff]   ;;  %v688_v22 = vld [vmem:[#allocation9 + $0x70] sm:$0xff]   ;;  %v691_v25 = vld [vmem:[#allocation9 + $0x28] sm:$0xff]   ;;  %625 = vmatprep.mubr.msk.bf16.mxu1 %vm807_vm0, %v806_v21  ;;  %s524_s2 = sshll.u32 %s808_s0, 4  ;;  %s525_s2 = int_to_ptr.vmem [resolvable:$true] %s524_s2 }
  0x30   :  { %v687_v20 = vld [vmem:[#allocation9 + $0x38] sm:$0xff]   ;;  %610 = vmatpush3.bf16.msra.mxu1 %v686_v19  ;;  %v689_v23 = vld [vmem:[#allocation9 + $0x30] sm:$0xff]   ;;  %v692_v26 = vld [vmem:[#allocation9 + $0x60] sm:$0xff]   ;;  %s772_s30 = scalar_lea.vmem %s525_s2, 256  ;;  %p777_p2 = scmp.lt.s32.totalorder %s525_s2, %s525_s2 }
  0x31   :  { %611 = vmatprep.subr.bf16.mxu1 %v806_v21  ;;  %v693_v27 = vld [vmem:[#allocation9 + $0x20] sm:$0xff]   ;;  %v694_v28 = vld [vmem:[#allocation9 + $0x58] sm:$0xff]   ;;  %v696_v30 = vld [vmem:[#allocation9 + $0x50] sm:$0xff]   ;;  %p773_p1 = scmp.ne.s32.totalorder %s525_s2, %s772_s30  ;;  %p778_p3 = scmp.lt.s32.totalorder %s772_s30, %s772_s30 }
  0x32   :  { %178 = vmatpush1.bf16.msra.mxu0 %v668_v6  ;;  %v695_v29 = vld [vmem:[#allocation9 + $0x18] sm:$0xff]   ;;  %v697_v31 = vld [vmem:[#allocation9 + $0x10] sm:$0xff]   ;;  %v698_v32 = vld [vmem:[#allocation9 + $0x48] sm:$0xff]  }
  0x33   :  { %179 = vmatprep.subr.bf16.mxu0 %v669_v7  ;;  %v699_v33 = vld [vmem:[#allocation9 + $0x8] sm:$0xff]   ;;  %v700_v34 = vld [vmem:[#allocation9 + $0x40] sm:$0xff]   ;;  %p779_p4 = por %p778_p3, %p777_p2 }
  0x34   :  { %612 = vmatpush3.bf16.msra.mxu1 %v688_v22  ;;  %v701_v35 = vld [vmem:[#allocation9] sm:$0xff]  }
  0x35   :  { %613 = vmatprep.subr.bf16.mxu1 %v806_v21  ;;  %p780_p5 = pnand %p779_p4, %p773_p1 }
  0x36   :  { %180 = vmatpush1.bf16.msra.mxu0 %v671_v8 }
  0x37   :  { %181 = vmatprep.subr.bf16.mxu0 %v672_v9 }
  0x38   :  { %614 = vmatpush3.bf16.msra.mxu1 %v690_v24 }
  0x39   :  { %615 = vmatprep.subr.bf16.mxu1 %v806_v21 }
  0x3a   :  { %182 = vmatpush1.bf16.msra.mxu0 %v674_v10 }
  0x3b   :  { %183 = vmatprep.subr.bf16.mxu0 %v675_v11 }
  0x3c   :  { %616 = vmatpush3.bf16.msra.mxu1 %v692_v26 }
  0x3d   :  { %617 = vmatprep.subr.bf16.mxu1 %v806_v21 }
  0x3e   :  { %184 = vmatpush1.bf16.msra.mxu0 %v677_v12 }
  0x3f   :  { %185 = vmatprep.subr.bf16.mxu0 %v678_v13 }
  0x40   :  { %618 = vmatpush3.bf16.msra.mxu1 %v694_v28 }
  0x41   :  { %619 = vmatprep.subr.bf16.mxu1 %v806_v21 }
  0x42   :  { %186 = vmatpush1.bf16.msra.mxu0 %v680_v14 }
  0x43   :  { %187 = vmatprep.subr.bf16.mxu0 %v681_v15 }
  0x44   :  { %620 = vmatpush3.bf16.msra.mxu1 %v696_v30 }
  0x45   :  { %621 = vmatprep.subr.bf16.mxu1 %v806_v21 }
  0x46   :  { %188 = vmatpush1.bf16.msra.mxu0 %v683_v16 }
  0x47   :  { %629 = vmatprep.subr.bf16.mxu0 %v806_v21 }
  0x48   :  { %622 = vmatpush3.bf16.msra.mxu1 %v698_v32 }
  0x49   :  { %206 = vmatmul.mubr.bf16.vlgmr.msra.gmra.mxu0 %v684_v17  ;;  %623 = vmatprep.subr.bf16.mxu1 %v806_v21 }
  0x4a   :  { %215 = vmatprep.mubr.bf16.mxu0 %v805_v0  ;;  %630 = vmatpush3.bf16.msra.mxu0 %v687_v20 }
  0x4b   :  { %631 = vmatprep.subr.bf16.mxu0 %v806_v21 }
  0x4c   :  { %624 = vmatpush3.bf16.msra.mxu1 %v700_v34 }
  0x4e   :  { %632 = vmatpush3.bf16.msra.mxu0 %v689_v23 }
  0x4f   :  { %633 = vmatprep.subr.bf16.mxu0 %v806_v21 }
  0x51   :  { %216 = vmatmul.mubr.bf16.gmra.mxu0 %v685_v18 }
  0x52   :  { %634 = vmatpush3.bf16.msra.mxu0 %v691_v25  ;;  %645 = vmatprep.mubr.msk.bf16.mxu0 %vm807_vm0, %v806_v21 }
  0x53   :  { %635 = vmatprep.subr.bf16.mxu0 %v806_v21 }
  0x56   :  { %636 = vmatpush3.bf16.msra.mxu0 %v693_v27 }
  0x57   :  { %637 = vmatprep.subr.bf16.mxu0 %v806_v21 }
  0x5a   :  { %638 = vmatpush3.bf16.msra.mxu0 %v695_v29 }
  0x5b   :  { %639 = vmatprep.subr.bf16.mxu0 %v806_v21 }
  0x5e   :  { %640 = vmatpush3.bf16.msra.mxu0 %v697_v31 }
  0x5f   :  { %641 = vmatprep.subr.bf16.mxu0 %v806_v21 }
  0x62   :  { %642 = vmatpush3.bf16.msra.mxu0 %v699_v33 }
  0x63   :  { %643 = vmatprep.subr.bf16.mxu0 %v806_v21 }
  0x66   :  { %644 = vmatpush3.bf16.msra.mxu0 %v701_v35 }
 0x109   :  { %v207_v36 = vpop.f32.mrf.mxu0 }
 0x10b   :  { %v209_v37 = vpop.f32.mrf.mxu0 }
 0x10d   :  { %v211_v38 = vpop.f32.mrf.mxu0 }
 0x10f   :  { %v213_v39 = vpop.f32.mrf.mxu0 }
 0x111   :  { %v217_v40 = vpop.f32.mrf.mxu0 }
 0x112   :  { %v226_v42 = vmul.f32 %v217_v40, %v207_v36  ;;  %v232_v43 = vmul.f32 %v217_v40, %v209_v37 }
 0x113   :  { %v219_v41 = vpop.f32.mrf.mxu0 }
 0x114   :  { %v228_v44 = vmul.f32 %v219_v41, %v209_v37  ;;  %v234_v45 = vmul.f32 %v219_v41, %v207_v36 }
 0x115   :  { %v221_v46 = vpop.f32.mrf.mxu0 }
 0x116   :  { %v230_v47 = vadd.f32 %v228_v44, %v226_v42  ;;  %v236_v48 = vsub.f32 %v232_v43, %v234_v45  ;;  %v227_v49 = vmul.f32 %v221_v46, %v211_v38  ;;  %v233_v50 = vmul.f32 %v221_v46, %v213_v39 }
 0x117   :  { %v223_v51 = vpop.f32.mrf.mxu0 }
 0x118   :  { %v238_v52 = vmul.f32 %v230_v47, %v230_v47  ;;  %v240_v53 = vmul.f32 %v236_v48, %v236_v48  ;;  %v229_v54 = vmul.f32 %v223_v51, %v213_v39  ;;  %v235_v55 = vmul.f32 %v223_v51, %v211_v38 }
 0x11a   :  { %v242_v56 = vadd.f32 %v240_v53, %v238_v52  ;;  %v231_v57 = vadd.f32 %v229_v54, %v227_v49  ;;  %v237_v58 = vsub.f32 %v233_v50, %v235_v55 }
 0x11c   :  { %704 = vrsqrt.f32 %v242_v56  ;;  %v239_v59 = vmul.f32 %v231_v57, %v231_v57  ;;  %v241_v60 = vmul.f32 %v237_v58, %v237_v58  ;;  %vm246_vm1 = vcmp.eq.f32.partialorder %v242_v56, inf }
 0x11d   :  { %v249_v0 = vand.u32 2147483648, %v242_v56  ;;  %vm248_vm2 = vcmp.eq.f32.partialorder %v242_v56, 0.0  ;;  %vm262_vm5 = vcmp.gt.f32.partialorder %v242_v56, 0.0 }
 0x11e   :  { %v243_v61 = vadd.f32 %v241_v60, %v239_v59 }
 0x120   :  { %706 = vrsqrt.f32 %v243_v61  ;;  %vm253_vm3 = vcmp.eq.f32.partialorder %v243_v61, inf  ;;  %v256_v6 = vand.u32 2147483648, %v243_v61  ;;  %vm255_vm4 = vcmp.eq.f32.partialorder %v243_v61, 0.0 }
 0x121   :  { %vm263_vm6 = vcmp.gt.f32.partialorder %v243_v61, 0.0 }
 0x129   :  { %v705_v62 = vpop.eup %704 }
 0x12a   :  { %v245_v63 = vmul.f32 %v705_v62, %v242_v56 }
 0x12c   :  { %v247_v1 = vsel %vm246_vm1, %v242_v56, %v245_v63 }
 0x12d   :  { %v250_v2 = vsel %vm248_vm2, %v249_v0, %v247_v1  ;;  %v707_v3 = vpop.eup %706 }
 0x12e   :  { %v258_v4 = vadd.f32 0.001, %v250_v2  ;;  %v252_v5 = vmul.f32 %v707_v3, %v243_v61 }
 0x130   :  { %708 = vrcp.f32 %v258_v4  ;;  %v254_v7 = vsel %vm253_vm3, %v243_v61, %v252_v5 }
 0x131   :  { %v257_v8 = vsel %vm255_vm4, %v256_v6, %v254_v7 }
 0x132   :  { %v259_v9 = vadd.f32 0.001, %v257_v8 }
 0x134   :  { %710 = vrcp.f32 %v259_v9 }
 0x13d   :  { %v709_v10 = vpop.eup %708 }
 0x13e   :  { %v264_v11 = vsel %vm262_vm5, %v709_v10, 0.0 }
 0x13f   :  { %v266_v14 = vmul.f32 %v264_v11, %v230_v47  ;;  %v278_v15 = vmul.f32 %v264_v11, %v236_v48 }
 0x141   :  { %v711_v12 = vpop.eup %710 }
 0x142   :  { %v265_v13 = vsel %vm263_vm6, %v711_v12, 0.0 }
 0x143   :  { %v267_v16 = vmul.f32 %v265_v13, %v231_v57  ;;  %v279_v17 = vmul.f32 %v265_v13, %v237_v58 }
 0x145   :  { %v584_v18 = vpack.c.bf16 %v267_v16, %v266_v14  ;;  %v589_v19 = vpack.c.bf16 %v279_v17, %v278_v15 }
 0x147   :  { %585 = vst [vmem:[#allocation2] sm:$0xff] %v584_v18   ;;  %590 = vst [vmem:[#allocation3] sm:$0xff] %v589_v19  }
 0x14e   :  { %v702_v20 = vld [vmem:[#allocation3] sm:$0xff]   ;;  %v703_v21 = vld [vmem:[#allocation2] sm:$0xff]  }
 0x14f   :  { %626 = vmatmul.mubr.bf16.vlgmr.msra.gmra.mxu1 %v702_v20  ;;  %646 = vmatmul.mubr.bf16.vlgmr.msra.gmra.mxu0 %v703_v21 }
 0x20f   :  { %v415_v22 = vpop.f32.mrf.mxu1  ;;  %v510_v23 = vpop.f32.mrf.mxu0 }
 0x210   :  { %v511_v24 = vadd.f32 %v510_v23, %v415_v22 }
 0x211   :  { %v627_v25 = vpop.f32.mrf.mxu1  ;;  %v647_v26 = vpop.f32.mrf.mxu0 }
 0x212   :  { %517 = vst [vmem:[#allocation10] sm:$0xff] %v511_v24 }
 0x213   :  { %v418_v27 = vpop.f32.mrf.mxu1  ;;  %v513_v28 = vpop.f32.mrf.mxu0 }
 0x214   :  { %v514_v29 = vadd.f32 %v513_v28, %v418_v27 }
 0x215   :  { %v628_v30 = vpop.f32.mrf.mxu1  ;;  %v648_v31 = vpop.f32.mrf.mxu0 }
 0x216   :  { %518 = vst [vmem:[#allocation10 + $0x8] sm:$0xff] %v514_v29 }
 0x217   :  { %783 = shalt.err (!%p780_p5)
}
 0x218   :  { %530 = dma.vmem_to_hbm [thread:$0]  %s525_s2, 256, %s850_s3, [#allocation6], %s799_s15, %s799_s15, %s800_s16  }
 0x219   :  { %796 = dma.done.wait [#allocation6], 256  }
 0x21a   :  { %797 = vsyncadd [#allocation6], 4294967040 }
 0x21b   :  { %534 = vsyncpa [#allocation5], 1 }
 0x21c   :  { %535 = vsyncpa [#allocation8], 1 }
 0x21d   :  { %536 = vsyncpa [#allocation6], 1 }

// kernel: tpu_custom_call.1
= control target key start
LH: loop header
LB: loop body
LE: loop exit
PB: predicated region body
PF: predicated region fallthrough
CT: control target
= control target key end

     0   :  { %8 = vsyncpa [#allocation5], 0  ;;  %s847_s0 = inlined_call_operand.hbm [shape: bf16[32,128], index: 0, kind: input, shape index: {}]   ;;  %s848_s1 = inlined_call_operand.hbm [shape: bf16[128,256], index: 1, kind: input, shape index: {}]   ;;  %s849_s2 = inlined_call_operand.hbm [shape: bf16[2,128,128], index: 2, kind: input, shape index: {}]   ;;  %s850_s3 = inlined_call_operand.hbm [shape: f32[16,128], index: 3, kind: output, shape index: {}]  }
   0x1   :  { %9 = vsyncpa [#allocation8], 0 }
   0x2   :  { %10 = vsyncpa [#allocation6], 0  ;;  %s798_s12 = smov [#allocation7]  }
   0x3   :  { %s28_s13 = sshll.u32 %s798_s12, 4  ;;  %s29_s13 = int_to_ptr.vmem [resolvable:$true] %s28_s13 }
   0x4   :  { %s720_s14 = scalar_lea.vmem %s29_s13, 2048  ;;  %p725_p1 = scmp.lt.s32.totalorder %s29_s13, %s29_s13 }
   0x5   :  { %p721_p0 = scmp.ne.s32.totalorder %s29_s13, %s720_s14  ;;  %p726_p2 = scmp.lt.s32.totalorder %s720_s14, %s720_s14 }
   0x7   :  { %p727_p3 = por %p726_p2, %p725_p1 }
   0x9   :  { %p728_p4 = pnand %p727_p3, %p721_p0 }
   0xb   :  { %731 = shalt.err (!%p728_p4)
}
   0xc   :  { %s799_s15 = smov 128   ;;  %s800_s16 = smov 8  }
   0xd   :  { %34 = dma.hbm_to_vmem [thread:$0]  %s848_s1, 2048, %s29_s13, [#allocation8], %s799_s15, %s799_s15, %s800_s16  }
   0xe   :  { %s801_s19 = smov [#allocation4]  }
   0xf   :  { %s16_s20 = sshll.u32 %s801_s19, 4  ;;  %s17_s20 = int_to_ptr.vmem [resolvable:$true] %s16_s20 }
  0x10   :  { %s740_s21 = scalar_lea.vmem %s17_s20, 256  ;;  %p745_p6 = scmp.lt.s32.totalorder %s17_s20, %s17_s20 }
  0x11   :  { %p741_p5 = scmp.ne.s32.totalorder %s17_s20, %s740_s21  ;;  %p746_p7 = scmp.lt.s32.totalorder %s740_s21, %s740_s21 }
  0x13   :  { %p747_p8 = por %p746_p7, %p745_p6 }
  0x15   :  { %p748_p9 = pnand %p747_p8, %p741_p5 }
  0x17   :  { %751 = shalt.err (!%p748_p9)
}
  0x18   :  { %s802_s22 = smov 64   ;;  %s803_s23 = smov 4  }
  0x19   :  { %22 = dma.hbm_to_vmem [thread:$0]  %s847_s0, 256, %s17_s20, [#allocation5], %s802_s22, %s802_s22, %s803_s23  }
  0x1a   :  { %s804_s26 = smov [#allocation9]  }
  0x1b   :  { %s40_s27 = sshll.u32 %s804_s26, 4  ;;  %s41_s27 = int_to_ptr.vmem [resolvable:$true] %s40_s27 }
  0x1c   :  { %s760_s1 = scalar_lea.vmem %s41_s27, 2048  ;;  %p765_p11 = scmp.lt.s32.totalorder %s41_s27, %s41_s27 }
  0x1d   :  { %p761_p10 = scmp.ne.s32.totalorder %s41_s27, %s760_s1  ;;  %p766_p12 = scmp.lt.s32.totalorder %s760_s1, %s760_s1 }
  0x1f   :  { %p767_p13 = por %p766_p12, %p765_p11 }
  0x21   :  { %p768_p0 = pnand %p767_p13, %p761_p10 }
  0x23   :  { %771 = shalt.err (!%p768_p0)
}
  0x24   :  { %46 = dma.hbm_to_vmem [thread:$0]  %s849_s2, 2048, %s41_s27, [#allocation8], %s802_s22, %s802_s22, %s803_s23  }
  0x25   :  { %792 = dma.done.wait [#allocation5], 256  }
  0x26   :  { %793 = vsyncadd [#allocation5], 4294967040 }
  0x27   :  { %794 = dma.done.wait [#allocation8], 4096  }
  0x28   :  { %795 = vsyncadd [#allocation8], 4294963200  ;;  %v805_v0 = vmov 0   ;;  %v660_v1 = vld [vmem:[#allocation7 + $0x74] ss:$8 sps:$4 sm:$0xff]   ;;  %v806_v21 = vmov 0.0  }
  0x29   :  { %205 = vmatprep.mubr.bf16.mxu0 %v805_v0  ;;  %v662_v2 = vld [vmem:[#allocation7 + $0x70] ss:$8 sps:$4 sm:$0xff]   ;;  %173 = vmatprep.subr.bf16.mxu0 %v660_v1  ;;  %v663_v3 = vld [vmem:[#allocation7 + $0x64] ss:$8 sps:$4 sm:$0xff]   ;;  %v665_v4 = vld [vmem:[#allocation7 + $0x60] ss:$8 sps:$4 sm:$0xff]  }
  0x2a   :  { %174 = vmatpush1.bf16.msra.mxu0 %v662_v2  ;;  %v666_v5 = vld [vmem:[#allocation7 + $0x54] ss:$8 sps:$4 sm:$0xff]   ;;  %v668_v6 = vld [vmem:[#allocation7 + $0x50] ss:$8 sps:$4 sm:$0xff]   ;;  %v669_v7 = vld [vmem:[#allocation7 + $0x44] ss:$8 sps:$4 sm:$0xff]   ;;  %609 = vmatprep.subr.bf16.mxu1 %v806_v21 }
  0x2b   :  { %175 = vmatprep.subr.bf16.mxu0 %v663_v3  ;;  %v671_v8 = vld [vmem:[#allocation7 + $0x40] ss:$8 sps:$4 sm:$0xff]   ;;  %v672_v9 = vld [vmem:[#allocation7 + $0x34] ss:$8 sps:$4 sm:$0xff]   ;;  %v674_v10 = vld [vmem:[#allocation7 + $0x30] ss:$8 sps:$4 sm:$0xff]  }
  0x2c   :  { %v675_v11 = vld [vmem:[#allocation7 + $0x24] ss:$8 sps:$4 sm:$0xff]   ;;  %v677_v12 = vld [vmem:[#allocation7 + $0x20] ss:$8 sps:$4 sm:$0xff]   ;;  %v678_v13 = vld [vmem:[#allocation7 + $0x14] ss:$8 sps:$4 sm:$0xff]  }
  0x2d   :  { %v680_v14 = vld [vmem:[#allocation7 + $0x10] ss:$8 sps:$4 sm:$0xff]   ;;  %v681_v15 = vld [vmem:[#allocation7 + $0x4] ss:$8 sps:$4 sm:$0xff]   ;;  %v683_v16 = vld [vmem:[#allocation7] ss:$8 sps:$4 sm:$0xff]  }
  0x2e   :  { %176 = vmatpush1.bf16.msra.mxu0 %v665_v4  ;;  %v684_v17 = vld [vmem:[#allocation4] sm:$0xff]   ;;  %v685_v18 = vld [vmem:[#allocation4 + $0x8] sm:$0xff]   ;;  %v690_v24 = vld [vmem:[#allocation9 + $0x68] sm:$0xff]   ;;  %vm807_vm0 = vmmov 0   ;;  %s808_s0 = smov [#allocation10]  }
  0x2f   :  { %177 = vmatprep.subr.bf16.mxu0 %v666_v5  ;;  %v686_v19 = vld [vmem:[#allocation9 + $0x78] sm:$0xff]   ;;  %v688_v22 = vld [vmem:[#allocation9 + $0x70] sm:$0xff]   ;;  %v691_v25 = vld [vmem:[#allocation9 + $0x28] sm:$0xff]   ;;  %625 = vmatprep.mubr.msk.bf16.mxu1 %vm807_vm0, %v806_v21  ;;  %s524_s2 = sshll.u32 %s808_s0, 4  ;;  %s525_s2 = int_to_ptr.vmem [resolvable:$true] %s524_s2 }
  0x30   :  { %v687_v20 = vld [vmem:[#allocation9 + $0x38] sm:$0xff]   ;;  %610 = vmatpush3.bf16.msra.mxu1 %v686_v19  ;;  %v689_v23 = vld [vmem:[#allocation9 + $0x30] sm:$0xff]   ;;  %v692_v26 = vld [vmem:[#allocation9 + $0x60] sm:$0xff]   ;;  %s772_s30 = scalar_lea.vmem %s525_s2, 256  ;;  %p777_p2 = scmp.lt.s32.totalorder %s525_s2, %s525_s2 }
  0x31   :  { %611 = vmatprep.subr.bf16.mxu1 %v806_v21  ;;  %v693_v27 = vld [vmem:[#allocation9 + $0x20] sm:$0xff]   ;;  %v694_v28 = vld [vmem:[#allocation9 + $0x58] sm:$0xff]   ;;  %v696_v30 = vld [vmem:[#allocation9 + $0x50] sm:$0xff]   ;;  %p773_p1 = scmp.ne.s32.totalorder %s525_s2, %s772_s30  ;;  %p778_p3 = scmp.lt.s32.totalorder %s772_s30, %s772_s30 }
  0x32   :  { %178 = vmatpush1.bf16.msra.mxu0 %v668_v6  ;;  %v695_v29 = vld [vmem:[#allocation9 + $0x18] sm:$0xff]   ;;  %v697_v31 = vld [vmem:[#allocation9 + $0x10] sm:$0xff]   ;;  %v698_v32 = vld [vmem:[#allocation9 + $0x48] sm:$0xff]  }
  0x33   :  { %179 = vmatprep.subr.bf16.mxu0 %v669_v7  ;;  %v699_v33 = vld [vmem:[#allocation9 + $0x8] sm:$0xff]   ;;  %v700_v34 = vld [vmem:[#allocation9 + $0x40] sm:$0xff]   ;;  %p779_p4 = por %p778_p3, %p777_p2 }
  0x34   :  { %612 = vmatpush3.bf16.msra.mxu1 %v688_v22  ;;  %v701_v35 = vld [vmem:[#allocation9] sm:$0xff]  }
  0x35   :  { %613 = vmatprep.subr.bf16.mxu1 %v806_v21  ;;  %p780_p5 = pnand %p779_p4, %p773_p1 }
  0x36   :  { %180 = vmatpush1.bf16.msra.mxu0 %v671_v8 }
  0x37   :  { %181 = vmatprep.subr.bf16.mxu0 %v672_v9 }
  0x38   :  { %614 = vmatpush3.bf16.msra.mxu1 %v690_v24 }
  0x39   :  { %615 = vmatprep.subr.bf16.mxu1 %v806_v21 }
  0x3a   :  { %182 = vmatpush1.bf16.msra.mxu0 %v674_v10 }
  0x3b   :  { %183 = vmatprep.subr.bf16.mxu0 %v675_v11 }
  0x3c   :  { %616 = vmatpush3.bf16.msra.mxu1 %v692_v26 }
  0x3d   :  { %617 = vmatprep.subr.bf16.mxu1 %v806_v21 }
  0x3e   :  { %184 = vmatpush1.bf16.msra.mxu0 %v677_v12 }
  0x3f   :  { %185 = vmatprep.subr.bf16.mxu0 %v678_v13 }
  0x40   :  { %618 = vmatpush3.bf16.msra.mxu1 %v694_v28 }
  0x41   :  { %619 = vmatprep.subr.bf16.mxu1 %v806_v21 }
  0x42   :  { %186 = vmatpush1.bf16.msra.mxu0 %v680_v14 }
  0x43   :  { %187 = vmatprep.subr.bf16.mxu0 %v681_v15 }
  0x44   :  { %620 = vmatpush3.bf16.msra.mxu1 %v696_v30 }
  0x45   :  { %621 = vmatprep.subr.bf16.mxu1 %v806_v21 }
  0x46   :  { %188 = vmatpush1.bf16.msra.mxu0 %v683_v16 }
  0x47   :  { %629 = vmatprep.subr.bf16.mxu0 %v806_v21 }
  0x48   :  { %622 = vmatpush3.bf16.msra.mxu1 %v698_v32 }
  0x49   :  { %206 = vmatmul.mubr.bf16.vlgmr.msra.gmra.mxu0 %v684_v17  ;;  %623 = vmatprep.subr.bf16.mxu1 %v806_v21 }
  0x4a   :  { %215 = vmatprep.mubr.bf16.mxu0 %v805_v0  ;;  %630 = vmatpush3.bf16.msra.mxu0 %v687_v20 }
  0x4b   :  { %631 = vmatprep.subr.bf16.mxu0 %v806_v21 }
  0x4c   :  { %624 = vmatpush3.bf16.msra.mxu1 %v700_v34 }
  0x4e   :  { %632 = vmatpush3.bf16.msra.mxu0 %v689_v23 }
  0x4f   :  { %633 = vmatprep.subr.bf16.mxu0 %v806_v21 }
  0x51   :  { %216 = vmatmul.mubr.bf16.gmra.mxu0 %v685_v18 }
  0x52   :  { %634 = vmatpush3.bf16.msra.mxu0 %v691_v25  ;;  %645 = vmatprep.mubr.msk.bf16.mxu0 %vm807_vm0, %v806_v21 }
  0x53   :  { %635 = vmatprep.subr.bf16.mxu0 %v806_v21 }
  0x56   :  { %636 = vmatpush3.bf16.msra.mxu0 %v693_v27 }
  0x57   :  { %637 = vmatprep.subr.bf16.mxu0 %v806_v21 }
  0x5a   :  { %638 = vmatpush3.bf16.msra.mxu0 %v695_v29 }
  0x5b   :  { %639 = vmatprep.subr.bf16.mxu0 %v806_v21 }
  0x5e   :  { %640 = vmatpush3.bf16.msra.mxu0 %v697_v31 }
  0x5f   :  { %641 = vmatprep.subr.bf16.mxu0 %v806_v21 }
  0x62   :  { %642 = vmatpush3.bf16.msra.mxu0 %v699_v33 }
  0x63   :  { %643 = vmatprep.subr.bf16.mxu0 %v806_v21 }
  0x66   :  { %644 = vmatpush3.bf16.msra.mxu0 %v701_v35 }
 0x109   :  { %v207_v36 = vpop.f32.mrf.mxu0 }
 0x10b   :  { %v209_v37 = vpop.f32.mrf.mxu0 }
 0x10d   :  { %v211_v38 = vpop.f32.mrf.mxu0 }
 0x10f   :  { %v213_v39 = vpop.f32.mrf.mxu0 }
 0x111   :  { %v217_v40 = vpop.f32.mrf.mxu0 }
 0x112   :  { %v226_v42 = vmul.f32 %v217_v40, %v207_v36  ;;  %v232_v43 = vmul.f32 %v217_v40, %v209_v37 }
 0x113   :  { %v219_v41 = vpop.f32.mrf.mxu0 }
 0x114   :  { %v228_v44 = vmul.f32 %v219_v41, %v209_v37  ;;  %v234_v45 = vmul.f32 %v219_v41, %v207_v36 }
 0x115   :  { %v221_v46 = vpop.f32.mrf.mxu0 }
 0x116   :  { %v230_v47 = vadd.f32 %v228_v44, %v226_v42  ;;  %v236_v48 = vsub.f32 %v232_v43, %v234_v45  ;;  %v227_v49 = vmul.f32 %v221_v46, %v211_v38  ;;  %v233_v50 = vmul.f32 %v221_v46, %v213_v39 }
 0x117   :  { %v223_v51 = vpop.f32.mrf.mxu0 }
 0x118   :  { %v238_v52 = vmul.f32 %v230_v47, %v230_v47  ;;  %v240_v53 = vmul.f32 %v236_v48, %v236_v48  ;;  %v229_v54 = vmul.f32 %v223_v51, %v213_v39  ;;  %v235_v55 = vmul.f32 %v223_v51, %v211_v38 }
 0x11a   :  { %v242_v56 = vadd.f32 %v240_v53, %v238_v52  ;;  %v231_v57 = vadd.f32 %v229_v54, %v227_v49  ;;  %v237_v58 = vsub.f32 %v233_v50, %v235_v55 }
 0x11c   :  { %704 = vrsqrt.f32 %v242_v56  ;;  %v239_v59 = vmul.f32 %v231_v57, %v231_v57  ;;  %v241_v60 = vmul.f32 %v237_v58, %v237_v58  ;;  %vm246_vm1 = vcmp.eq.f32.partialorder %v242_v56, inf }
 0x11d   :  { %v249_v0 = vand.u32 2147483648, %v242_v56  ;;  %vm248_vm2 = vcmp.eq.f32.partialorder %v242_v56, 0.0  ;;  %vm262_vm5 = vcmp.gt.f32.partialorder %v242_v56, 0.0 }
 0x11e   :  { %v243_v61 = vadd.f32 %v241_v60, %v239_v59 }
 0x120   :  { %706 = vrsqrt.f32 %v243_v61  ;;  %vm253_vm3 = vcmp.eq.f32.partialorder %v243_v61, inf  ;;  %v256_v6 = vand.u32 2147483648, %v243_v61  ;;  %vm255_vm4 = vcmp.eq.f32.partialorder %v243_v61, 0.0 }
 0x121   :  { %vm263_vm6 = vcmp.gt.f32.partialorder %v243_v61, 0.0 }
 0x129   :  { %v705_v62 = vpop.eup %704 }
 0x12a   :  { %v245_v63 = vmul.f32 %v705_v62, %v242_v56 }
 0x12c   :  { %v247_v1 = vsel %vm246_vm1, %v242_v56, %v245_v63 }
 0x12d   :  { %v250_v2 = vsel %vm248_vm2, %v249_v0, %v247_v1  ;;  %v707_v3 = vpop.eup %706 }
 0x12e   :  { %v258_v4 = vadd.f32 0.001, %v250_v2  ;;  %v252_v5 = vmul.f32 %v707_v3, %v243_v61 }
 0x130   :  { %708 = vrcp.f32 %v258_v4  ;;  %v254_v7 = vsel %vm253_vm3, %v243_v61, %v252_v5 }
 0x131   :  { %v257_v8 = vsel %vm255_vm4, %v256_v6, %v254_v7 }
 0x132   :  { %v259_v9 = vadd.f32 0.001, %v257_v8 }
 0x134   :  { %710 = vrcp.f32 %v259_v9 }
 0x13d   :  { %v709_v10 = vpop.eup %708 }
 0x13e   :  { %v264_v11 = vsel %vm262_vm5, %v709_v10, 0.0 }
 0x13f   :  { %v266_v14 = vmul.f32 %v264_v11, %v230_v47  ;;  %v278_v15 = vmul.f32 %v264_v11, %v236_v48 }
 0x141   :  { %v711_v12 = vpop.eup %710 }
 0x142   :  { %v265_v13 = vsel %vm263_vm6, %v711_v12, 0.0 }
 0x143   :  { %v267_v16 = vmul.f32 %v265_v13, %v231_v57  ;;  %v279_v17 = vmul.f32 %v265_v13, %v237_v58 }
 0x145   :  { %v584_v18 = vpack.c.bf16 %v267_v16, %v266_v14  ;;  %v589_v19 = vpack.c.bf16 %v279_v17, %v278_v15 }
 0x147   :  { %585 = vst [vmem:[#allocation2] sm:$0xff] %v584_v18   ;;  %590 = vst [vmem:[#allocation3] sm:$0xff] %v589_v19  }
 0x14e   :  { %v702_v20 = vld [vmem:[#allocation3] sm:$0xff]   ;;  %v703_v21 = vld [vmem:[#allocation2] sm:$0xff]  }
 0x14f   :  { %626 = vmatmul.mubr.bf16.vlgmr.msra.gmra.mxu1 %v702_v20  ;;  %646 = vmatmul.mubr.bf16.vlgmr.msra.gmra.mxu0 %v703_v21 }
 0x20f   :  { %v415_v22 = vpop.f32.mrf.mxu1  ;;  %v510_v23 = vpop.f32.mrf.mxu0 }
 0x210   :  { %v511_v24 = vadd.f32 %v510_v23, %v415_v22 }
 0x211   :  { %v627_v25 = vpop.f32.mrf.mxu1  ;;  %v647_v26 = vpop.f32.mrf.mxu0 }
 0x212   :  { %517 = vst [vmem:[#allocation10] sm:$0xff] %v511_v24 }
 0x213   :  { %v418_v27 = vpop.f32.mrf.mxu1  ;;  %v513_v28 = vpop.f32.mrf.mxu0 }
 0x214   :  { %v514_v29 = vadd.f32 %v513_v28, %v418_v27 }
 0x215   :  { %v628_v30 = vpop.f32.mrf.mxu1  ;;  %v648_v31 = vpop.f32.mrf.mxu0 }
 0x216   :  { %518 = vst [vmem:[#allocation10 + $0x8] sm:$0xff] %v514_v29 }
 0x217   :  { %783 = shalt.err (!%p780_p5)
}
 0x218   :  { %530 = dma.vmem_to_hbm [thread:$0]  %s525_s2, 256, %s850_s3, [#allocation6], %s799_s15, %s799_s15, %s800_s16  }
 0x219   :  { %796 = dma.done.wait [#allocation6], 256  }
 0x21a   :  { %797 = vsyncadd [#allocation6], 4294967040 }
 0x21b   :  { %534 = vsyncpa [#allocation5], 1 }
 0x21c   :  { %535 = vsyncpa [#allocation8], 1 }
 0x21d   :  { %536 = vsyncpa [#allocation6], 1 }

</bundles_post_ra>
